<compile_context>
chip_gen: v7x
topology: tpu7x:2x2x1
jax: 0.10.0
libtpu: 0.0.40
codegen_flags: <defaults>
</compile_context>

<pallas_src>
import jax
import jax.numpy as jnp
from jax.experimental import pallas as pl
from jax.experimental.pallas import tpu as pltpu


def _round_up(x, m):
    return (x + m - 1) // m * m


def _cdiv(a, b):
    return -(-a // b)


# ---------------------------------------------------------------------------
# Kernels
# ---------------------------------------------------------------------------

def _swiglu_kernel_single(x_ref, wu_ref, wg_ref, w2_ref, o_ref):
    """nk == 1 fast path: whole hidden dim in one step, no accumulator scratch."""
    x = x_ref[...].astype(jnp.bfloat16)
    up = jnp.dot(x, wu_ref[...], preferred_element_type=jnp.float32)
    gate = jnp.dot(x, wg_ref[...], preferred_element_type=jnp.float32)
    # PyTorch: h, g = fc1(x).chunk(2, dim=-1); out = fc2(silu(g) * h)
    z = (gate * jax.lax.logistic(gate)) * up
    o_ref[...] = jnp.dot(z.astype(w2_ref.dtype), w2_ref[...],
                         preferred_element_type=jnp.float32).astype(o_ref.dtype)


def _swiglu_kernel_acc(x_ref, wu_ref, wg_ref, w2_ref, o_ref, acc_ref):
    """nk >= 2 path: hidden dim streamed; fc2 partials accumulate in f32 scratch.

    x_ref  : (tm, d)  row tile (input dtype), resident across the hidden axis
    wu_ref : (d, th)  bf16 "up" half of fc1   (first chunk)
    wg_ref : (d, th)  bf16 "gate" half of fc1 (second chunk, silu'd)
    w2_ref : (th, d)  bf16
    o_ref  : (tm, d)  output dtype
    acc_ref: (tm, d)  f32 accumulator scratch
    """
    k = pl.program_id(1)
    last = pl.num_programs(1) - 1

    x = x_ref[...].astype(jnp.bfloat16)
    up = jnp.dot(x, wu_ref[...], preferred_element_type=jnp.float32)
    gate = jnp.dot(x, wg_ref[...], preferred_element_type=jnp.float32)
    z = (gate * jax.lax.logistic(gate)) * up
    part = jnp.dot(z.astype(w2_ref.dtype), w2_ref[...],
                   preferred_element_type=jnp.float32)

    @pl.when(k == 0)
    def _():
        acc_ref[...] = part                       # init with first partial, no zero-fill

    @pl.when(jnp.logical_and(k > 0, k < last))
    def _():
        acc_ref[...] += part

    @pl.when(k == last)                           # nk >= 2, so k==0 and k==last never coincide
    def _():
        o_ref[...] = (acc_ref[...] + part).astype(o_ref.dtype)   # fused accumulate+writeback


# ---------------------------------------------------------------------------
# Tile selection
# ---------------------------------------------------------------------------

def _device_kind():
    try:
        return jax.devices()[0].device_kind.lower()
    except Exception:
        return ""


def _is_v7(kind):
    return "v7" in kind or "tpu7" in kind


def _vmem_limit_bytes(kind):
    if _is_v7(kind):
        return 48 * 1024 * 1024       # v7x: 64 MiB physical VMEM per TensorCore
    return 96 * 1024 * 1024           # v5e / v6e: 128 MiB physical


def _budget_fraction(kind):
    # v7x: extra headroom for Mosaic internal scratch on the 64 MiB part.
    return 0.6 if _is_v7(kind) else 0.75


def _preferred_row_tile(kind):
    if "v5" in kind:
        return 512                    # v5e roofline ~240 flops/byte -> 512 gives headroom
    if _is_v7(kind):
        return 512                    # v7x ~311 flops/byte -> >=512 keeps weight DMA hidden
    return 1024                       # v6e ~680 flops/byte -> needs tm ~ 1024


def _choose_hidden_tile(h, pref=512):
    if h <= pref:
        return h                      # small h: single hidden step, weights fully resident
    for cand in range(pref, 127, -128):
        if h % cand == 0:
            return cand
    # TODO(synk): h with no lane-aligned divisor <= pref keeps the full hidden dim
    # resident; pad h to a multiple of 128 at init time for such models.
    return h


def _footprint_bytes(tm, th, d, x_isz, out_isz):
    x_b = 2 * tm * d * x_isz                   # double-buffered x tile (input dtype)
    w_b = 2 * (2 * d * th + th * d) * 2        # double-buffered bf16 w_up/w_gate/w2 tiles
    o_b = 2 * tm * d * out_isz                 # double-buffered output tile
    acc = tm * d * 4                           # f32 accumulator scratch
    tmp = 14 * tm * th                         # up/gate/z f32 + bf16 z kernel temporaries
    return x_b + w_b + o_b + acc + tmp


# ---------------------------------------------------------------------------
# Wrapper
# ---------------------------------------------------------------------------

def prepare_swiglu_weights(fc1_weight, fc2_weight):
    """Init-time: split fc1.weight (2h, d) into (d, h) up / gate halves and transpose
    fc2.weight (d, h) -> (h, d), casting to bf16 ONCE (cache these; do not re-cast per call)."""
    two_h, d = fc1_weight.shape
    h = two_h // 2
    w1t = jnp.asarray(fc1_weight).T                        # (d, 2h)
    w_up = w1t[:, :h].astype(jnp.bfloat16)                 # first chunk  -> multiplied
    w_gate = w1t[:, h:].astype(jnp.bfloat16)               # second chunk -> silu'd
    w2 = jnp.asarray(fc2_weight).T.astype(jnp.bfloat16)    # (h, d)
    return w_up, w_gate, w2


def swiglu_pallas(x, w_up, w_gate, w2, *, row_tile=None, hidden_tile=None):
    """SwiGLU forward.

    x      : (B, S, d) — any float dtype; cast to bf16 inside the kernel (f32 accumulate).
    w_up   : (d, h)  bf16 == fc1.weight.T[:, :h]
    w_gate : (d, h)  bf16 == fc1.weight.T[:, h:]
    w2     : (h, d)  bf16 == fc2.weight.T
    Returns (B, S, d) in x.dtype.
    """
    B, S, d = x.shape
    h = w_up.shape[1]
    assert w_gate.shape == (d, h) and w2.shape == (h, d)

    # Fallback cast only — callers should use prepare_swiglu_weights once at init.
    if w_up.dtype != jnp.bfloat16:
        w_up = w_up.astype(jnp.bfloat16)
    if w_gate.dtype != jnp.bfloat16:
        w_gate = w_gate.astype(jnp.bfloat16)
    if w2.dtype != jnp.bfloat16:
        w2 = w2.astype(jnp.bfloat16)

    out_dtype = x.dtype
    x_isz = jnp.dtype(x.dtype).itemsize
    out_isz = jnp.dtype(out_dtype).itemsize
    M = B * S
    x2 = x.reshape(M, d)               # contiguous reshape: no HBM copy, no pad, no cast

    kind = _device_kind()
    vmem_limit = _vmem_limit_bytes(kind)
    budget = int(vmem_limit * _budget_fraction(kind))

    th = hidden_tile if hidden_tile is not None else _choose_hidden_tile(h)
    assert h % th == 0, "hidden tile must divide h"

    pref_tm = row_tile if row_tile is not None else _preferred_row_tile(kind)
    tm = max(8, min(_round_up(pref_tm, 8), _round_up(M, 8)))

    # v7x has 2 TensorCores: make sure the "parallel" row axis has >= 2 tiles.
    if _is_v7(kind):
        while tm >= 512 and _cdiv(M, tm) < 2:
            tm //= 2

    # VMEM fit: shrink the hidden tile first (only changes the number of k steps);
    # protect the row tile (it sets weight-reuse intensity and MXU fill).
    while th % 256 == 0 and _footprint_bytes(tm, th, d, x_isz, out_isz) > budget:
        th //= 2
    tm_floor = min(tm, 256)
    while tm > tm_floor and _footprint_bytes(tm, th, d, x_isz, out_isz) > budget:
        tm = max(tm_floor, (tm // 2) // 8 * 8)

    nm = _cdiv(M, tm)                  # partial final row block is masked by Pallas
    nk = h // th

    cost = pl.CostEstimate(
        flops=6 * M * d * h,                                   # 2 fc1 dots + fc2
        transcendentals=M * h,                                 # one logistic per hidden elem
        bytes_accessed=M * d * (x_isz + out_isz) + nm * 3 * d * h * 2,
    )

    if nk == 1:
        # Fast path: full hidden dim per step — no accumulator scratch, no branches.
        out2 = pl.pallas_call(
            _swiglu_kernel_single,
            out_shape=jax.ShapeDtypeStruct((M, d), out_dtype),
            grid_spec=pltpu.PrefetchScalarGridSpec(
                num_scalar_prefetch=0,
                grid=(nm,),
                in_specs=[
                    pl.BlockSpec((tm, d), lambda i: (i, 0)),   # x row tile
                    pl.BlockSpec((d, h), lambda i: (0, 0)),    # w_up (resident)
                    pl.BlockSpec((d, h), lambda i: (0, 0)),    # w_gate (resident)
                    pl.BlockSpec((h, d), lambda i: (0, 0)),    # w2 (resident)
                ],
                out_specs=pl.BlockSpec((tm, d), lambda i: (i, 0)),
            ),
            compiler_params=pltpu.CompilerParams(
                dimension_semantics=("parallel",),
                vmem_limit_bytes=vmem_limit,
            ),
            cost_estimate=cost,
        )(x2, w_up, w_gate, w2)
    else:
        out2 = pl.pallas_call(
            _swiglu_kernel_acc,
            out_shape=jax.ShapeDtypeStruct((M, d), out_dtype),
            grid_spec=pltpu.PrefetchScalarGridSpec(
                num_scalar_prefetch=0,
                grid=(nm, nk),                                     # reduction (hidden) axis last
                in_specs=[
                    pl.BlockSpec((tm, d), lambda i, k: (i, 0)),    # x rows, resident over k
                    pl.BlockSpec((d, th), lambda i, k: (0, k)),    # w_up tile
                    pl.BlockSpec((d, th), lambda i, k: (0, k)),    # w_gate tile
                    pl.BlockSpec((th, d), lambda i, k: (k, 0)),    # w2 tile
                ],
                out_specs=pl.BlockSpec((tm, d), lambda i, k: (i, 0)),
                scratch_shapes=[pltpu.VMEM((tm, d), jnp.float32)],
            ),
            compiler_params=pltpu.CompilerParams(
                dimension_semantics=("parallel", "arbitrary"),
                vmem_limit_bytes=vmem_limit,
            ),
            cost_estimate=cost,
        )(x2, w_up, w_gate, w2)

    return out2.reshape(B, S, d)


# ---------------------------------------------------------------------------
# Reference + test
# ---------------------------------------------------------------------------

def swiglu_ref(x, fc1_w, fc2_w):
    # Mirrors the PyTorch module exactly: h, g = fc1(x).chunk(2, -1); fc2(silu(g) * h)
    y = x @ fc1_w.T
    hdim = fc2_w.shape[1]
    h_part = y[..., :hdim]
    g_part = y[..., hdim:]
    return (jax.nn.silu(g_part) * h_part) @ fc2_w.T


if __name__ == "__main__":
    # Small shapes consistent with the module: batch=2, seq=8, d=32, h=64.
    B, S, d, h = 2, 8, 32, 64

    key = jax.random.PRNGKey(0)
    kx, k1, k2 = jax.random.split(key, 3)

    x = jax.random.normal(kx, (B, S, d), dtype=jnp.float32)
    fc1_w = jax.random.normal(k1, (2 * h, d), dtype=jnp.float32) * 0.05   # fc1.weight (2h, d)
    fc2_w = jax.random.normal(k2, (d, h), dtype=jnp.float32) * 0.05       # fc2.weight (d, h)

    # Weights split & cast to bf16 ONCE (init-time), reused across all calls.
    w_up, w_gate, w2t = prepare_swiglu_weights(fc1_w, fc2_w)

    # Case 1: nk == 1 fast path.
    out = jax.block_until_ready(swiglu_pallas(x, w_up, w_gate, w2t))
    ref = swiglu_ref(x, fc1_w, fc2_w)
    assert out.shape == (B, S, d)
    assert jnp.allclose(out, ref, atol=1e-2, rtol=1e-2), "mismatch vs reference"

    # Case 2: ragged row count (exercises the partial final row block, no jnp.pad).
    x3 = jax.random.normal(jax.random.PRNGKey(1), (3, 7, d), dtype=jnp.float32)
    out3 = jax.block_until_ready(swiglu_pallas(x3, w_up, w_gate, w2t))
    ref3 = swiglu_ref(x3, fc1_w, fc2_w)
    assert jnp.allclose(out3, ref3, atol=1e-2, rtol=1e-2), "mismatch (ragged rows)"

    # Case 3: nk > 1 accumulator path (lane-aligned hidden tile: h2=256, th=128).
    h2 = 256
    fc1b_w = jax.random.normal(jax.random.PRNGKey(2), (2 * h2, d), jnp.float32) * 0.05
    fc2b_w = jax.random.normal(jax.random.PRNGKey(3), (d, h2), jnp.float32) * 0.05
    w_up2, w_gate2, w2t2 = prepare_swiglu_weights(fc1b_w, fc2b_w)
    out_acc = jax.block_until_ready(
        swiglu_pallas(x, w_up2, w_gate2, w2t2, hidden_tile=128))
    ref_acc = swiglu_ref(x, fc1b_w, fc2b_w)
    assert jnp.allclose(out_acc, ref_acc, atol=1e-2, rtol=1e-2), "mismatch (nk>1 path)"

    print("KERNEL_OK")
</pallas_src>

<mosaic_0001>
module attributes {stable_mosaic.version = 11 : i64} {
  func.func @_swiglu_kernel_single(%arg0: i32, %arg1: memref<16x32xf32, #tpu.memory_space<vmem>>, %arg2: memref<32x64xbf16, #tpu.memory_space<vmem>>, %arg3: memref<32x64xbf16, #tpu.memory_space<vmem>>, %arg4: memref<64x32xbf16, #tpu.memory_space<vmem>>, %arg5: memref<16x32xf32, #tpu.memory_space<vmem>>) attributes {dimension_semantics = [#tpu.dimension_semantics<parallel>], iteration_bounds = array<i64: 1>, scalar_prefetch = 0 : i64, scratch_operands = 0 : i64, tpu.core_type = #tpu.core_type<tc>, window_params = [{transform_indices = @transform_0, window_bounds = array<i64: 16, 32>}, {pipeline_mode = #tpu.pipeline_mode<synchronous>, transform_indices = @transform_1, window_bounds = array<i64: 32, 64>}, {pipeline_mode = #tpu.pipeline_mode<synchronous>, transform_indices = @transform_2, window_bounds = array<i64: 32, 64>}, {pipeline_mode = #tpu.pipeline_mode<synchronous>, transform_indices = @transform_3, window_bounds = array<i64: 64, 32>}, {transform_indices = @transform_4, window_bounds = array<i64: 16, 32>}]} {
    %c0 = arith.constant 0 : index
    %c0_0 = arith.constant 0 : index
    %0 = vector.load %arg1[%c0, %c0_0] : memref<16x32xf32, #tpu.memory_space<vmem>>, vector<16x32xf32>
    %1 = arith.truncf %0 : vector<16x32xf32> to vector<16x32xbf16>
    %c0_1 = arith.constant 0 : index
    %c0_2 = arith.constant 0 : index
    %2 = vector.load %arg2[%c0_1, %c0_2] : memref<32x64xbf16, #tpu.memory_space<vmem>>, vector<32x64xbf16>
    %cst = arith.constant dense<0.000000e+00> : vector<16x64xf32>
    %3 = tpu.matmul %1, %2, %cst {dimension_numbers = #tpu.dot_dimension_numbers<[1], [0], [0], [1], [0, 0, 1, 1], [], []>} : vector<16x32xbf16>, vector<32x64xbf16>, vector<16x64xf32> -> vector<16x64xf32>
    %c0_3 = arith.constant 0 : index
    %c0_4 = arith.constant 0 : index
    %4 = vector.load %arg3[%c0_3, %c0_4] : memref<32x64xbf16, #tpu.memory_space<vmem>>, vector<32x64xbf16>
    %cst_5 = arith.constant dense<0.000000e+00> : vector<16x64xf32>
    %5 = tpu.matmul %1, %4, %cst_5 {dimension_numbers = #tpu.dot_dimension_numbers<[1], [0], [0], [1], [0, 0, 1, 1], [], []>} : vector<16x32xbf16>, vector<32x64xbf16>, vector<16x64xf32> -> vector<16x64xf32>
    %6 = arith.negf %5 : vector<16x64xf32>
    %7 = math.exp %6 : vector<16x64xf32>
    %cst_6 = arith.constant 1.000000e+00 : f32
    %8 = vector.broadcast %cst_6 : f32 to vector<16x64xf32>
    %9 = arith.addf %8, %7 : vector<16x64xf32>
    %10 = arith.divf %8, %9 : vector<16x64xf32>
    %11 = arith.mulf %5, %10 : vector<16x64xf32>
    %12 = arith.mulf %11, %3 : vector<16x64xf32>
    %13 = arith.truncf %12 : vector<16x64xf32> to vector<16x64xbf16>
    %c0_7 = arith.constant 0 : index
    %c0_8 = arith.constant 0 : index
    %14 = vector.load %arg4[%c0_7, %c0_8] : memref<64x32xbf16, #tpu.memory_space<vmem>>, vector<64x32xbf16>
    %cst_9 = arith.constant dense<0.000000e+00> : vector<16x32xf32>
    %15 = tpu.matmul %13, %14, %cst_9 {dimension_numbers = #tpu.dot_dimension_numbers<[1], [0], [0], [1], [0, 0, 1, 1], [], []>} : vector<16x64xbf16>, vector<64x32xbf16>, vector<16x32xf32> -> vector<16x32xf32>
    %c0_10 = arith.constant 0 : index
    %c0_11 = arith.constant 0 : index
    %16 = vector.load %arg5[%c0_10, %c0_11] : memref<16x32xf32, #tpu.memory_space<vmem>>, vector<16x32xf32>
    tpu.vector_store %arg5[%c0_10, %c0_11], %15 {strides = array<i32>} : memref<16x32xf32, #tpu.memory_space<vmem>>, vector<16x32xf32>,
    return
  }
  func.func @transform_0(%arg0: i32) -> (i32, i32) {
    %c0_i32 = arith.constant 0 : i32
    %c0_i32_0 = arith.constant 0 : i32
    return %arg0, %c0_i32 : i32, i32
  }
  func.func @transform_1(%arg0: i32) -> (i32, i32) {
    %c0_i32 = arith.constant 0 : i32
    %c0_i32_0 = arith.constant 0 : i32
    %c0_i32_1 = arith.constant 0 : i32
    return %c0_i32, %c0_i32_0 : i32, i32
  }
  func.func @transform_2(%arg0: i32) -> (i32, i32) {
    %c0_i32 = arith.constant 0 : i32
    %c0_i32_0 = arith.constant 0 : i32
    %c0_i32_1 = arith.constant 0 : i32
    return %c0_i32, %c0_i32_0 : i32, i32
  }
  func.func @transform_3(%arg0: i32) -> (i32, i32) {
    %c0_i32 = arith.constant 0 : i32
    %c0_i32_0 = arith.constant 0 : i32
    %c0_i32_1 = arith.constant 0 : i32
    return %c0_i32, %c0_i32_0 : i32, i32
  }
  func.func @transform_4(%arg0: i32) -> (i32, i32) {
    %c0_i32 = arith.constant 0 : i32
    %c0_i32_0 = arith.constant 0 : i32
    return %arg0, %c0_i32 : i32, i32
  }
}

</mosaic_0001>

<bundles_post_ra>
// kernel: tpu_custom_call.1
= control target key start
LH: loop header
LB: loop body
LE: loop exit
PB: predicated region body
PF: predicated region fallthrough
CT: control target
= control target key end

     0   :  { %9 = vsyncpa [#allocation3], 0  ;;  %s632_s0 = inlined_call_operand.hbm [shape: f32[16,32], index: 0, kind: input, shape index: {}]   ;;  %s633_s1 = inlined_call_operand.hbm [shape: bf16[32,64], index: 1, kind: input, shape index: {}]   ;;  %s634_s2 = inlined_call_operand.hbm [shape: bf16[32,64], index: 2, kind: input, shape index: {}]   ;;  %s635_s3 = inlined_call_operand.hbm [shape: bf16[64,32], index: 3, kind: input, shape index: {}]   ;;  %s636_s4 = inlined_call_operand.hbm [shape: f32[16,32], index: 4, kind: output, shape index: {}]  }
   0x1   :  { %10 = vsyncpa [#allocation6], 0 }
   0x2   :  { %11 = vsyncpa [#allocation9], 0 }
   0x3   :  { %12 = vsyncpa [#allocation4], 0  ;;  %s507_s15 = smov [#allocation5]   ;;  %s389_s19 = scalar_lea.hbm %s633_s1, 256 }
   0x4   :  { %s30_s16 = sshll.u32 %s507_s15, 4  ;;  %p390_p0 = scmp.ne.s32.totalorder %s633_s1, %s389_s19  ;;  %s31_s16 = int_to_ptr.vmem [resolvable:$true] %s30_s16 }
   0x5   :  { %p393_p1 = scmp.lt.u32.totalorder %s389_s19, %s633_s1 }
   0x7   :  { %p395_p2 = pnand %p393_p1, %p390_p0 }
   0x9   :  { %398 = shalt.err (!%p395_p2)
}
   0xa   :  { %s399_s24 = scalar_lea.vmem %s31_s16, 256  ;;  %p404_p4 = scmp.lt.s32.totalorder %s31_s16, %s31_s16 }
   0xb   :  { %p400_p3 = scmp.ne.s32.totalorder %s31_s16, %s399_s24  ;;  %p405_p5 = scmp.lt.s32.totalorder %s399_s24, %s399_s24 }
   0xd   :  { %p406_p6 = por %p405_p5, %p404_p4 }
   0xf   :  { %p407_p7 = pnand %p406_p6, %p400_p3 }
  0x11   :  { %410 = shalt.err (!%p407_p7)
}
  0x12   :  { %s508_s25 = smov 64   ;;  %s509_s26 = smov 4  }
  0x13   :  { %36 = dma.hbm_to_vmem [thread:$0]  %s633_s1, 256, %s31_s16, [#allocation6], %s508_s25, %s508_s25, %s509_s26  }
  0x14   :  { %s510_s29 = smov [#allocation2]   ;;  %s411_s7 = scalar_lea.hbm %s632_s0, 256 }
  0x15   :  { %s18_s30 = sshll.u32 %s510_s29, 4  ;;  %p412_p8 = scmp.ne.s32.totalorder %s632_s0, %s411_s7  ;;  %s19_s30 = int_to_ptr.vmem [resolvable:$true] %s18_s30 }
  0x16   :  { %p415_p9 = scmp.lt.u32.totalorder %s411_s7, %s632_s0 }
  0x18   :  { %p417_p10 = pnand %p415_p9, %p412_p8 }
  0x1a   :  { %420 = shalt.err (!%p417_p10)
}
  0x1b   :  { %s421_s12 = scalar_lea.vmem %s19_s30, 256  ;;  %p426_p12 = scmp.lt.s32.totalorder %s19_s30, %s19_s30 }
  0x1c   :  { %p422_p11 = scmp.ne.s32.totalorder %s19_s30, %s421_s12  ;;  %p427_p13 = scmp.lt.s32.totalorder %s421_s12, %s421_s12 }
  0x1e   :  { %p428_p0 = por %p427_p13, %p426_p12 }
  0x20   :  { %p429_p1 = pnand %p428_p0, %p422_p11 }
  0x22   :  { %432 = shalt.err (!%p429_p1)
}
  0x23   :  { %s511_s1 = smov 128   ;;  %s512_s13 = smov 8  }
  0x24   :  { %24 = dma.hbm_to_vmem [thread:$0]  %s632_s0, 256, %s19_s30, [#allocation3], %s511_s1, %s511_s1, %s512_s13  }
  0x25   :  { %s513_s16 = smov [#allocation7]   ;;  %s514_s18 = smov [#allocation8]  }
  0x26   :  { %s42_s17 = sshll.u32 %s513_s16, 4  ;;  %s54_s19 = sshll.u32 %s514_s18, 4  ;;  %s43_s17 = int_to_ptr.vmem [resolvable:$true] %s42_s17  ;;  %s573_s19 = int_to_ptr.vmem [resolvable:$true] %s54_s19 }
  0x27   :  { %s433_s22 = scalar_lea.hbm %s634_s2, 256 }
  0x28   :  { %p434_p2 = scmp.ne.s32.totalorder %s634_s2, %s433_s22  ;;  %p437_p3 = scmp.lt.u32.totalorder %s433_s22, %s634_s2 }
  0x2a   :  { %p439_p4 = pnand %p437_p3, %p434_p2 }
  0x2c   :  { %442 = shalt.err (!%p439_p4)
}
  0x2d   :  { %s443_s0 = scalar_lea.vmem %s43_s17, 256  ;;  %p448_p6 = scmp.lt.s32.totalorder %s43_s17, %s43_s17 }
  0x2e   :  { %p444_p5 = scmp.ne.s32.totalorder %s43_s17, %s443_s0  ;;  %p449_p7 = scmp.lt.s32.totalorder %s443_s0, %s443_s0 }
  0x30   :  { %p450_p8 = por %p449_p7, %p448_p6 }
  0x32   :  { %p451_p9 = pnand %p450_p8, %p444_p5 }
  0x34   :  { %454 = shalt.err (!%p451_p9)
}
  0x35   :  { %48 = dma.hbm_to_vmem [thread:$0]  %s634_s2, 256, %s43_s17, [#allocation6], %s508_s25, %s508_s25, %s509_s26  }
  0x36   :  { %s455_s7 = scalar_lea.hbm %s635_s3, 512 }
  0x37   :  { %p456_p10 = scmp.ne.s32.totalorder %s635_s3, %s455_s7  ;;  %p459_p11 = scmp.lt.u32.totalorder %s455_s7, %s635_s3 }
  0x39   :  { %p461_p12 = pnand %p459_p11, %p456_p10 }
  0x3b   :  { %464 = shalt.err (!%p461_p12)
}
  0x3c   :  { %s465_s12 = scalar_lea.vmem %s573_s19, 512  ;;  %p470_p0 = scmp.lt.s32.totalorder %s573_s19, %s573_s19 }
  0x3d   :  { %p466_p13 = scmp.ne.s32.totalorder %s573_s19, %s465_s12  ;;  %p471_p1 = scmp.lt.s32.totalorder %s465_s12, %s465_s12 }
  0x3f   :  { %p472_p2 = por %p471_p1, %p470_p0 }
  0x41   :  { %p473_p3 = pnand %p472_p2, %p466_p13 }
  0x43   :  { %476 = shalt.err (!%p473_p3)
}
  0x44   :  { %60 = dma.hbm_to_vmem [thread:$0]  %s635_s3, 512, %s573_s19, [#allocation9], %s508_s25, %s508_s25, %s509_s26  }
  0x45   :  { %499 = dma.done.wait [#allocation3], 256  }
  0x46   :  { %500 = vsyncadd [#allocation3], 4294967040 }
  0x47   :  { %501 = dma.done.wait [#allocation6], 512  }
  0x48   :  { %502 = vsyncadd [#allocation6], 4294966784 }
  0x49   :  { %503 = dma.done.wait [#allocation9], 512  }
  0x4a   :  { %504 = vsyncadd [#allocation9], 4294966784  ;;  %v515_v0 = vmov 0.0   ;;  %vm516_vm0 = vmmov 0   ;;  %v373_v1 = vld [vmem:[#allocation5] sm:$0xff]   ;;  %v374_v2 = vld [vmem:[#allocation5 + $0x8] sm:$0xff]  }
  0x4b   :  { %334 = vmatprep.subr.bf16.mxu1 %v515_v0  ;;  %338 = vmatprep.mubr.msk.bf16.mxu1 %vm516_vm0, %v515_v0  ;;  %v74_v3 = vld [vmem:[#allocation2] sm:$0xff]  ;;  %v75_v4 = vld [vmem:[#allocation2 + $0x8] sm:$0xff]  ;;  %vm93_vm1 = vcmask 261120   ;;  %v377_v8 = vld [vmem:[#allocation8] sm:$0xff]   ;;  %vm244_vm2 = vcmask 523264   ;;  %s517_s3 = smov [#allocation10]  }
  0x4c   :  { %350 = vmatprep.subr.bf16.mxu0 %v515_v0  ;;  %358 = vmatprep.mubr.msk.bf16.mxu0 %vm516_vm0, %v515_v0  ;;  %v375_v5 = vld [vmem:[#allocation7] sm:$0xff]   ;;  %v76_v6 = vpack.c.bf16 %v75_v4, %v74_v3  ;;  %v376_v7 = vld [vmem:[#allocation7 + $0x8] sm:$0xff]   ;;  %v378_v9 = vld [vmem:[#allocation8 + $0x8] sm:$0xff]   ;;  %s296_s25 = sshll.u32 %s517_s3, 4  ;;  %s297_s25 = int_to_ptr.vmem [resolvable:$true] %s296_s25 }
  0x4d   :  { %335 = vmatpush3.bf16.msra.mxu1 %v373_v1  ;;  %351 = vmatpush3.bf16.msra.mxu0 %v377_v8  ;;  %v379_v10 = vld [vmem:[#allocation8 + $0x10] sm:$0xff]   ;;  %v380_v11 = vld [vmem:[#allocation8 + $0x18] sm:$0xff]   ;;  %s477_s26 = scalar_lea.vmem %s297_s25, 256  ;;  %p482_p5 = scmp.lt.s32.totalorder %s297_s25, %s297_s25 }
  0x4e   :  { %336 = vmatprep.subr.bf16.mxu1 %v515_v0  ;;  %352 = vmatprep.subr.bf16.mxu0 %v515_v0  ;;  %p478_p4 = scmp.ne.s32.totalorder %s297_s25, %s477_s26  ;;  %p483_p6 = scmp.lt.s32.totalorder %s477_s26, %s477_s26 }
  0x50   :  { %p484_p7 = por %p483_p6, %p482_p5 }
  0x51   :  { %337 = vmatpush3.bf16.msra.mxu1 %v374_v2  ;;  %353 = vmatpush3.bf16.msra.mxu0 %v378_v9 }
  0x52   :  { %342 = vmatprep.subr.bf16.mxu1 %v515_v0  ;;  %354 = vmatprep.subr.bf16.mxu0 %v515_v0  ;;  %p485_p8 = pnand %p484_p7, %p478_p4 }
  0x54   :  { %339 = vmatmul.mubr.msk.bf16.vlgmr.msra.gmra.mrb[0].mxu1 %vm93_vm1, %v76_v6 }
  0x55   :  { %343 = vmatpush3.bf16.msra.mxu1 %v375_v5  ;;  %346 = vmatprep.mubr.msk.bf16.mxu1 %vm516_vm0, %v515_v0 }
  0x56   :  { %344 = vmatprep.subr.bf16.mxu1 %v515_v0  ;;  %355 = vmatpush3.bf16.msra.mxu0 %v379_v10 }
  0x57   :  { %356 = vmatprep.subr.bf16.mxu0 %v515_v0 }
  0x59   :  { %345 = vmatpush3.bf16.msra.mxu1 %v376_v7 }
  0x5a   :  { %357 = vmatpush3.bf16.msra.mxu0 %v380_v11 }
  0x5c   :  { %347 = vmatmul.mubr.msk.bf16.vlgmr.msra.gmra.mrb[4].mxu1 %vm93_vm1, %v76_v6 }
 0x127   :  { %v131_v12 = vpop.f32.mrb[0].mxu1 }
 0x128   :  { %v340_v13 = vpop.f32.mrb[1].mxu1 }
 0x129   :  { %v134_v14 = vpop.f32.mrb[2].mxu1 }
 0x12a   :  { %v341_v15 = vpop.f32.mrb[3].mxu1 }
 0x12f   :  { %v188_v16 = vpop.f32.mrb[4].mxu1 }
 0x130   :  { %v316_v17 = vmul.f32 -1.442695, %v188_v16  ;;  %v348_v18 = vpop.f32.mrb[5].mxu1 }
 0x131   :  { %v191_v19 = vpop.f32.mrb[6].mxu1 }
 0x132   :  { %381 = vpow2.f32 %v316_v17  ;;  %v317_v20 = vmul.f32 -1.442695, %v191_v19  ;;  %v349_v21 = vpop.f32.mrb[7].mxu1 }
 0x134   :  { %383 = vpow2.f32 %v317_v20 }
 0x13c   :  { %v382_v22 = vpop.eup %381 }
 0x13d   :  { %v201_v23 = vadd.f32 1.0, %v382_v22 }
 0x13e   :  { %v384_v24 = vpop.eup %383 }
 0x13f   :  { %385 = vrcp.f32 %v201_v23  ;;  %v202_v25 = vadd.f32 1.0, %v384_v24 }
 0x141   :  { %387 = vrcp.f32 %v202_v25 }
 0x149   :  { %v386_v26 = vpop.eup %385 }
 0x14a   :  { %v207_v27 = vmul.f32 %v386_v26, %v188_v16 }
 0x14b   :  { %v388_v28 = vpop.eup %387 }
 0x14c   :  { %v209_v29 = vmul.f32 %v207_v27, %v131_v12  ;;  %v208_v30 = vmul.f32 %v388_v28, %v191_v19 }
 0x14e   :  { %v210_v31 = vmul.f32 %v208_v30, %v134_v14 }
 0x150   :  { %v211_v32 = vpack.c.bf16 %v210_v31, %v209_v29 }
 0x152   :  { %359 = vmatmul.mubr.msk.bf16.vlgmr.msra.gmra.mrb[0].mxu0 %vm244_vm2, %v211_v32 }
 0x225   :  { %v282_v33 = vpop.f32.mrb[0].mxu0 }
 0x226   :  { %289 = vst.msk [vmem:[#allocation10] sm:$0xff] %vm93_vm1, %v282_v33  ;;  %v360_v34 = vpop.f32.mrb[1].mxu0 }
 0x227   :  { %v285_v35 = vpop.f32.mrb[2].mxu0 }
 0x228   :  { %290 = vst.msk [vmem:[#allocation10 + $0x8] sm:$0xff] %vm93_vm1, %v285_v35  ;;  %v361_v36 = vpop.f32.mrb[3].mxu0 }
 0x229   :  { %488 = shalt.err (!%p485_p8)
}
 0x22a   :  { %s489_s17 = scalar_lea.hbm %s636_s4, 256 }
 0x22b   :  { %p490_p9 = scmp.ne.s32.totalorder %s636_s4, %s489_s17  ;;  %p493_p10 = scmp.lt.u32.totalorder %s489_s17, %s636_s4 }
 0x22d   :  { %p495_p11 = pnand %p493_p10, %p490_p9 }
 0x22f   :  { %498 = shalt.err (!%p495_p11)
}
 0x230   :  { %302 = dma.vmem_to_hbm [thread:$0]  %s297_s25, 256, %s636_s4, [#allocation4], %s511_s1, %s511_s1, %s512_s13  }
 0x231   :  { %505 = dma.done.wait [#allocation4], 256  }
 0x232   :  { %506 = vsyncadd [#allocation4], 4294967040 }
 0x233   :  { %306 = vsyncpa [#allocation3], 1 }
 0x234   :  { %307 = vsyncpa [#allocation6], 1 }
 0x235   :  { %308 = vsyncpa [#allocation9], 1 }
 0x236   :  { %309 = vsyncpa [#allocation4], 1 }

</bundles_post_ra>
